<compile_context>
chip_gen: v7x
topology: tpu7x:2x2x1
jax: 0.10.0
libtpu: 0.0.40
codegen_flags: <defaults>
</compile_context>

<pallas_src>
import jax
import jax.numpy as jnp
from jax.experimental import pallas as pl
from jax.experimental.pallas import tpu as pltpu


# ----------------------------- Pallas kernel ---------------------------------
def value_head_kernel(x_ref, w1_ref, b1_ref, w2_ref, b2_ref, o_ref):
    # x_ref:  (tb, in_dim)   activations tile (streamed, double-buffered)
    # w1_ref: (in_dim, hid)  resident, same dtype as x
    # b1_ref: (1, hid)       resident, f32
    # w2_ref: (1, hid)       resident, f32 (PyTorch [out=1, in=hid] row)
    # b2_ref: (1, 1)         resident, f32
    # o_ref:  (1, 1, tb)     lane-dense f32 value row for this batch tile
    h = jnp.dot(x_ref[...], w1_ref[...], preferred_element_type=jnp.float32)
    h = jnp.maximum(h + b1_ref[...], 0.0)                       # (tb, hid), f32

    # (1, hid) . (tb, hid)^T -> (1, tb): batch index lands on lanes, so the
    # store below is lane-dense (no masked 1-of-128-lane vst).
    v = jax.lax.dot_general(
        w2_ref[...], h,
        dimension_numbers=(((1,), (1,)), ((), ())),
        preferred_element_type=jnp.float32)
    v = v + b2_ref[...]                                         # (1, tb), f32
    o_ref[...] = v.reshape(o_ref.shape).astype(o_ref.dtype)


def _round_up(n, m):
    return ((n + m - 1) // m) * m


def value_head_forward(x, w1, b1, w2, b2):
    """x: [B, input_dim] -> [B, 1] (float32).

    w1: [input_dim, hidden_dim]; b1: [1, hidden_dim];
    w2: [1, hidden_dim] (PyTorch [out, in] layout); b2: [1, 1].
    """
    B, in_dim = x.shape
    hid = w1.shape[1]
    x_item = jnp.dtype(x.dtype).itemsize

    # ---- batch-tile selection (kernel is HBM-bandwidth bound) ----------------
    # Conservative per-row live-VMEM estimate:
    #   2x x tile (double buffer) + up to 3 f32 (tb, hid) intermediates
    #   + 2x f32 lane-dense output row.
    per_row = 2 * in_dim * x_item + 3 * hid * 4 + 2 * 4
    vmem_budget = 28 * 1024 * 1024                 # safe on v7x 64 MiB physical
    stream_target = 8 * 1024 * 1024                # ~8 MiB of x per grid step
    tb_cap = min(vmem_budget // per_row, stream_target // (in_dim * x_item))
    tb_cap = max(128, (tb_cap // 128) * 128)

    if B <= tb_cap:
        # Single grid step: no forced split on single-TC chips (v5e/v6e); one
        # tiny fast step is also fine on v7x.
        tb = _round_up(B, 8)
        num_tiles = 1
    else:
        tb = tb_cap
        num_tiles = pl.cdiv(B, tb)
        if num_tiles % 2:
            # Balance v7x's two TensorCores across the "parallel" batch axis.
            num_tiles += 1
            tb = _round_up(pl.cdiv(B, num_tiles), 128)
            num_tiles = pl.cdiv(B, tb)

    # NOTE: no jnp.pad of x.  If the last tile is ragged, Pallas loads only the
    # valid rows and the rest of the VMEM buffer holds garbage; since each
    # output row depends solely on its own input row, those garbage rows are
    # simply sliced off by [:B] below.  This avoids a full extra HBM pass.

    # Estimated live VMEM; raise the scoped limit only when it exceeds the
    # smallest default (v5e: 16 MiB).
    weights_bytes = 2 * (in_dim * hid * x_item + hid * 4 + hid * 4 + 4)
    est_bytes = tb * per_row + weights_bytes
    cp_kwargs = dict(dimension_semantics=("parallel",))
    if est_bytes > 16 * 1024 * 1024:
        cp_kwargs["vmem_limit_bytes"] = int(est_bytes + 8 * 1024 * 1024)

    out = pl.pallas_call(
        value_head_kernel,
        out_shape=jax.ShapeDtypeStruct((num_tiles, 1, tb), jnp.float32),
        grid_spec=pltpu.PrefetchScalarGridSpec(
            num_scalar_prefetch=0,
            grid=(num_tiles,),
            in_specs=[
                pl.BlockSpec((tb, in_dim), lambda i: (i, 0)),    # x tile (streamed)
                pl.BlockSpec((in_dim, hid), lambda i: (0, 0)),   # W1 (resident)
                pl.BlockSpec((1, hid), lambda i: (0, 0)),        # b1
                pl.BlockSpec((1, hid), lambda i: (0, 0)),        # W2 row
                pl.BlockSpec((1, 1), lambda i: (0, 0)),          # b2
            ],
            out_specs=pl.BlockSpec((1, 1, tb), lambda i: (i, 0, 0)),
        ),
        compiler_params=pltpu.CompilerParams(**cp_kwargs),
    )(
        x,
        w1.astype(x.dtype),                 # match activation dtype (bf16-friendly)
        b1.astype(jnp.float32),
        w2.astype(jnp.float32),
        b2.astype(jnp.float32),
    )

    # (num_tiles, 1, tb) -> (num_tiles*tb, 1) -> drop ragged-tail rows.
    return out.reshape(num_tiles * tb, 1)[:B]


# --------------------------- parameter init -----------------------------------
def orthogonal_init(key, shape, gain):
    """Deterministic orthogonal init (approximates nn.init.orthogonal_)."""
    rows, cols = shape
    n = max(rows, cols)
    a = jax.random.normal(key, (n, min(rows, cols)), dtype=jnp.float32)
    q, r = jnp.linalg.qr(a)
    q = q * jnp.sign(jnp.diag(r))  # make decomposition unique
    q = q[:rows, :cols] if rows >= cols else q.T[:rows, :cols]
    return gain * q


def make_value_head_params(key, input_dim=128, hidden_dim=64, output_dim=1,
                           gain=0.01):
    k1, k2 = jax.random.split(key)
    # PyTorch Linear weight is [out, in].
    w1_pt = orthogonal_init(k1, (hidden_dim, input_dim), gain)    # [hid, in]
    w2_pt = orthogonal_init(k2, (output_dim, hidden_dim), gain)   # [1, hid]
    w1 = jnp.asarray(w1_pt.T, dtype=jnp.float32)                  # [in, hid]
    b1 = jnp.zeros((1, hidden_dim), dtype=jnp.float32)
    w2 = jnp.asarray(w2_pt, dtype=jnp.float32)                    # [1, hid] (row)
    b2 = jnp.zeros((1, output_dim), dtype=jnp.float32)
    return w1, b1, w2, b2


# ------------------------------- main -----------------------------------------
if __name__ == "__main__":
    key = jax.random.PRNGKey(0)
    kx, kp, kx2, kx3 = jax.random.split(key, 4)

    INPUT_DIM, HIDDEN_DIM, OUTPUT_DIM = 128, 64, 1
    w1, b1, w2, b2 = make_value_head_params(
        kp, INPUT_DIM, HIDDEN_DIM, OUTPUT_DIM, gain=0.01)

    def ref_fn(xx):
        return jnp.maximum(xx @ w1 + b1, 0.0) @ w2.T + b2

    # Small batch (single grid step, tile = batch).
    B = 8
    x = jax.random.normal(kx, (B, INPUT_DIM), dtype=jnp.float32)
    out = jax.block_until_ready(value_head_forward(x, w1, b1, w2, b2))
    assert out.shape == (B, OUTPUT_DIM), out.shape
    assert jnp.allclose(out, ref_fn(x), atol=1e-5, rtol=1e-5), "small-B mismatch"

    # Mid-size batch: still a single tile (no forced split), exact block.
    B2 = 1000
    x2 = jax.random.normal(kx2, (B2, INPUT_DIM), dtype=jnp.float32)
    out2 = jax.block_until_ready(value_head_forward(x2, w1, b1, w2, b2))
    assert out2.shape == (B2, OUTPUT_DIM), out2.shape
    assert jnp.allclose(out2, ref_fn(x2), atol=1e-5, rtol=1e-5), "mid-B mismatch"

    # Non-multiple-of-8 batch: exercises the no-pad ragged-block path
    # (garbage tail rows computed in-kernel, sliced off by [:B]).
    B3 = 37
    x3 = jax.random.normal(kx3, (B3, INPUT_DIM), dtype=jnp.float32)
    out3 = jax.block_until_ready(value_head_forward(x3, w1, b1, w2, b2))
    assert out3.shape == (B3, OUTPUT_DIM), out3.shape
    assert jnp.allclose(out3, ref_fn(x3), atol=1e-5, rtol=1e-5), "ragged mismatch"

    print("KERNEL_OK")
</pallas_src>

<mosaic_0001>
module attributes {stable_mosaic.version = 11 : i64} {
  func.func @value_head_kernel(%arg0: i32, %arg1: memref<8x128xf32, #tpu.memory_space<vmem>>, %arg2: memref<128x64xf32, #tpu.memory_space<vmem>>, %arg3: memref<1x64xf32, #tpu.memory_space<vmem>>, %arg4: memref<1x64xf32, #tpu.memory_space<vmem>>, %arg5: memref<1x1xf32, #tpu.memory_space<vmem>>, %arg6: memref<1x1x8xf32, #tpu.memory_space<vmem>>) attributes {dimension_semantics = [#tpu.dimension_semantics<parallel>], iteration_bounds = array<i64: 1>, scalar_prefetch = 0 : i64, scratch_operands = 0 : i64, tpu.core_type = #tpu.core_type<tc>, window_params = [{transform_indices = @transform_0, window_bounds = array<i64: 8, 128>}, {pipeline_mode = #tpu.pipeline_mode<synchronous>, transform_indices = @transform_1, window_bounds = array<i64: 128, 64>}, {pipeline_mode = #tpu.pipeline_mode<synchronous>, transform_indices = @transform_2, window_bounds = array<i64: 1, 64>}, {pipeline_mode = #tpu.pipeline_mode<synchronous>, transform_indices = @transform_3, window_bounds = array<i64: 1, 64>}, {pipeline_mode = #tpu.pipeline_mode<synchronous>, transform_indices = @transform_4, window_bounds = array<i64: 1, 1>}, {transform_indices = @transform_5, window_bounds = array<i64: 1, 1, 8>}]} {
    %c0 = arith.constant 0 : index
    %c0_0 = arith.constant 0 : index
    %0 = vector.load %arg1[%c0, %c0_0] : memref<8x128xf32, #tpu.memory_space<vmem>>, vector<8x128xf32>
    %c0_1 = arith.constant 0 : index
    %c0_2 = arith.constant 0 : index
    %1 = vector.load %arg2[%c0_1, %c0_2] : memref<128x64xf32, #tpu.memory_space<vmem>>, vector<128x64xf32>
    %cst = arith.constant dense<0.000000e+00> : vector<8x64xf32>
    %2 = tpu.matmul %0, %1, %cst {dimension_numbers = #tpu.dot_dimension_numbers<[1], [0], [0], [1], [0, 0, 1, 1], [], []>} : vector<8x128xf32>, vector<128x64xf32>, vector<8x64xf32> -> vector<8x64xf32>
    %c0_3 = arith.constant 0 : index
    %c0_4 = arith.constant 0 : index
    %3 = vector.load %arg3[%c0_3, %c0_4] : memref<1x64xf32, #tpu.memory_space<vmem>>, vector<1x64xf32>
    %4 = vector.broadcast %3 : vector<1x64xf32> to vector<8x64xf32>
    %5 = arith.addf %2, %4 : vector<8x64xf32>
    %cst_5 = arith.constant 0.000000e+00 : f32
    %6 = vector.broadcast %cst_5 : f32 to vector<8x64xf32>
    %7 = arith.maximumf %5, %6 : vector<8x64xf32>
    %c0_6 = arith.constant 0 : index
    %c0_7 = arith.constant 0 : index
    %8 = vector.load %arg4[%c0_6, %c0_7] : memref<1x64xf32, #tpu.memory_space<vmem>>, vector<1x64xf32>
    %cst_8 = arith.constant dense<0.000000e+00> : vector<1x8xf32>
    %9 = tpu.matmul %8, %7, %cst_8 {dimension_numbers = #tpu.dot_dimension_numbers<[1], [1], [0], [0], [0, 0, 1, 0], [], []>} : vector<1x64xf32>, vector<8x64xf32>, vector<1x8xf32> -> vector<1x8xf32>
    %c0_9 = arith.constant 0 : index
    %c0_10 = arith.constant 0 : index
    %10 = vector.load %arg5[%c0_9, %c0_10] : memref<1x1xf32, #tpu.memory_space<vmem>>, vector<1x1xf32>
    %11 = vector.broadcast %10 : vector<1x1xf32> to vector<1x8xf32>
    %12 = arith.addf %9, %11 : vector<1x8xf32>
    %13 = vector.shape_cast %12 : vector<1x8xf32> to vector<1x1x8xf32>
    %c0_11 = arith.constant 0 : index
    %c0_12 = arith.constant 0 : index
    %c0_13 = arith.constant 0 : index
    %14 = vector.load %arg6[%c0_11, %c0_12, %c0_13] : memref<1x1x8xf32, #tpu.memory_space<vmem>>, vector<1x1x8xf32>
    tpu.vector_store %arg6[%c0_11, %c0_12, %c0_13], %13 {strides = array<i32>} : memref<1x1x8xf32, #tpu.memory_space<vmem>>, vector<1x1x8xf32>,
    return
  }
  func.func @transform_0(%arg0: i32) -> (i32, i32) {
    %c0_i32 = arith.constant 0 : i32
    %c0_i32_0 = arith.constant 0 : i32
    return %arg0, %c0_i32 : i32, i32
  }
  func.func @transform_1(%arg0: i32) -> (i32, i32) {
    %c0_i32 = arith.constant 0 : i32
    %c0_i32_0 = arith.constant 0 : i32
    %c0_i32_1 = arith.constant 0 : i32
    return %c0_i32, %c0_i32_0 : i32, i32
  }
  func.func @transform_2(%arg0: i32) -> (i32, i32) {
    %c0_i32 = arith.constant 0 : i32
    %c0_i32_0 = arith.constant 0 : i32
    %c0_i32_1 = arith.constant 0 : i32
    return %c0_i32, %c0_i32_0 : i32, i32
  }
  func.func @transform_3(%arg0: i32) -> (i32, i32) {
    %c0_i32 = arith.constant 0 : i32
    %c0_i32_0 = arith.constant 0 : i32
    %c0_i32_1 = arith.constant 0 : i32
    return %c0_i32, %c0_i32_0 : i32, i32
  }
  func.func @transform_4(%arg0: i32) -> (i32, i32) {
    %c0_i32 = arith.constant 0 : i32
    %c0_i32_0 = arith.constant 0 : i32
    %c0_i32_1 = arith.constant 0 : i32
    return %c0_i32, %c0_i32_0 : i32, i32
  }
  func.func @transform_5(%arg0: i32) -> (i32, i32, i32) {
    %c0_i32 = arith.constant 0 : i32
    %c0_i32_0 = arith.constant 0 : i32
    %c0_i32_1 = arith.constant 0 : i32
    return %arg0, %c0_i32, %c0_i32_0 : i32, i32, i32
  }
}

</mosaic_0001>

<bundles_post_ra>
// kernel: tpu_custom_call.1
= control target key start
LH: loop header
LB: loop body
LE: loop exit
PB: predicated region body
PF: predicated region fallthrough
CT: control target
= control target key end

     0   :  { %s445_s0 = inlined_call_operand.vmem [shape: f32[8,128], index: 0, kind: input, shape index: {}]   ;;  %s446_s1 = inlined_call_operand.vmem [shape: f32[128,64], index: 1, kind: input, shape index: {}]   ;;  %s447_s2 = inlined_call_operand.vmem [shape: f32[1,64], index: 2, kind: input, shape index: {}]   ;;  %s448_s3 = inlined_call_operand.vmem [shape: f32[1,64], index: 3, kind: input, shape index: {}]   ;;  %s449_s4 = inlined_call_operand.<no memory space> [shape: f32[1,1], index: 4, kind: input, shape index: {}]   ;;  %s450_s5 = inlined_call_operand.hbm [shape: f32[1,1,8], index: 5, kind: output, shape index: {}]  }
   0x1   :  { %v10_v0 = vstv %s449_s4 }
   0x2   :  { %11 = vst [vmem:[#allocation2] sm:$0x1] %v10_v0 }
   0x3   :  { %v24_v1 = vld [vmem:[%s446_s1] sm:$0xff]  ;;  %v25_v2 = vld [vmem:[%s446_s1 + $0x8] sm:$0xff]  ;;  %v26_v3 = vld [vmem:[%s446_s1 + $0x10] sm:$0xff]  ;;  %v338_v4 = vmov 0.0|0.0   ;;  %vm339_vm0 = vmmov 0   ;;  %v340_v7 = vmov 0.0  }
   0x4   :  { %284 = vmatprep.subr.bf16.mxu0 %v338_v4  ;;  %v285_v5 = vpack.c.bf16 %v25_v2, %v24_v1  ;;  %v27_v6 = vld [vmem:[%s446_s1 + $0x18] sm:$0xff]  ;;  %276 = vmatprep.mubr.msk.f32.mxu0 %vm339_vm0, %v340_v7  ;;  %v28_v9 = vld [vmem:[%s446_s1 + $0x20] sm:$0xff]  ;;  %v29_v10 = vld [vmem:[%s446_s1 + $0x28] sm:$0xff] }
   0x5   :  { %279 = vmatprep.subr.mxu1 %v340_v7  ;;  %281 = vmatprep.mubr.msk.f32.mxu1 %vm339_vm0, %v340_v7  ;;  %v288_v8 = vpack.c.bf16 %v27_v6, %v26_v3 }
   0x6   :  { %286 = vmatpush3.bf16.msra.mxu0 %v285_v5 }
   0x7   :  { %287 = vmatprep.subr.bf16.mxu0 %v338_v4 }
   0x8   :  { %12 = vsyncpa [#allocation4], 0  ;;  %v291_v11 = vpack.c.bf16 %v29_v10, %v28_v9  ;;  %v30_v12 = vld [vmem:[%s446_s1 + $0x30] sm:$0xff]  ;;  %v31_v13 = vld [vmem:[%s446_s1 + $0x38] sm:$0xff]  ;;  %v341_v29 = vmov 0   ;;  %vm129_vm1 = vcmask 523264   ;;  %v125_v36 = vlaneseq }
   0x9   :  { %v294_v14 = vpack.c.bf16 %v31_v13, %v30_v12  ;;  %v32_v15 = vld [vmem:[%s446_s1 + $0x40] sm:$0xff]  ;;  %v33_v16 = vld [vmem:[%s446_s1 + $0x48] sm:$0xff]  ;;  %v34_v18 = vld [vmem:[%s446_s1 + $0x50] sm:$0xff]  ;;  %313 = vset.pattern.permute.xlu0 %v341_v29  ;;  %vm206_vm2 = vcmask 57344  }
   0xa   :  { %289 = vmatpush3.bf16.msra.mxu0 %v288_v8  ;;  %v297_v17 = vpack.c.bf16 %v33_v16, %v32_v15  ;;  %v35_v19 = vld [vmem:[%s446_s1 + $0x58] sm:$0xff]  ;;  %v36_v21 = vld [vmem:[%s446_s1 + $0x60] sm:$0xff]  ;;  %v37_v22 = vld [vmem:[%s446_s1 + $0x68] sm:$0xff]  ;;  %v126_v37 = vshrl.u32 %v125_v36, 7 }
   0xb   :  { %290 = vmatprep.subr.bf16.mxu0 %v338_v4  ;;  %v300_v20 = vpack.c.bf16 %v35_v19, %v34_v18  ;;  %v303_v23 = vpack.c.bf16 %v37_v22, %v36_v21  ;;  %v38_v24 = vld [vmem:[%s446_s1 + $0x70] sm:$0xff]  ;;  %v39_v25 = vld [vmem:[%s446_s1 + $0x78] sm:$0xff]  ;;  %v23_v27 = vld [vmem:[%s445_s0] sm:$0xff]  ;;  %s342_s0 = smov [#allocation3]  }
   0xc   :  { %v306_v26 = vpack.c.bf16 %v39_v25, %v38_v24  ;;  %v119_v28 = vld [vmem:[#allocation2] sm:$0x1]  ;;  %v127_v38 = vsub.s32 0, %v126_v37  ;;  %s214_s30 = sshll.u32 %s342_s0, 4  ;;  %s215_s30 = int_to_ptr.vmem [resolvable:$true] %s214_s30 }
   0xd   :  { %122 = vperm.xlu0 %313, %v119_v28   ;;  %v222_v30 = vld [vmem:[%s447_s2] ss:$0 sm:$0xff]  ;;  %s314_s2 = scalar_lea.vmem %s215_s30, 16  ;;  %s318_s6 = scalar_lea.vmem %s215_s30, 32 }
   0xe   :  { %292 = vmatpush3.bf16.msra.mxu0 %v291_v11  ;;  %v118_v35 = vld [vmem:[%s448_s3] sm:$0x1]  ;;  %p315_p0 = scmp.ne.s32.totalorder %s215_s30, %s314_s2  ;;  %p319_p1 = scmp.lt.s32.totalorder %s215_s30, %s215_s30 }
   0xf   :  { %293 = vmatprep.subr.bf16.mxu0 %v338_v4  ;;  %p320_p2 = scmp.lt.s32.totalorder %s318_s6, %s314_s2 }
  0x11   :  { %p321_p3 = por %p320_p2, %p319_p1 }
  0x12   :  { %295 = vmatpush3.bf16.msra.mxu0 %v294_v14 }
  0x13   :  { %296 = vmatprep.subr.bf16.mxu0 %v338_v4  ;;  %p322_p4 = pnand %p321_p3, %p315_p0 }
  0x16   :  { %298 = vmatpush3.bf16.msra.mxu0 %v297_v17 }
  0x17   :  { %299 = vmatprep.subr.bf16.mxu0 %v338_v4 }
  0x1a   :  { %301 = vmatpush3.bf16.msra.mxu0 %v300_v20 }
  0x1b   :  { %302 = vmatprep.subr.bf16.mxu0 %v338_v4 }
  0x1e   :  { %304 = vmatpush3.bf16.msra.mxu0 %v303_v23 }
  0x1f   :  { %305 = vmatprep.subr.bf16.mxu0 %v338_v4 }
  0x22   :  { %307 = vmatpush3.bf16.msra.mxu0 %v306_v26 }
  0x25   :  { %277 = vmatmul.mubr.f32.vlgmr.msra.gmra.mrb[0].mxu0 %v23_v27 }
  0x8c   :  { %v123_v39 = vpop.permute.xlu0 %122 }
  0x8d   :  { %v128_v40 = vrot.slane %v123_v39, %v127_v38 }
  0xf8   :  { %v113_v31 = vpop.f32.mrb[0].mxu0 }
  0xf9   :  { %v114_v32 = vadd.f32 %v222_v30, %v113_v31  ;;  %v278_v33 = vpop.f32.mrb[1].mxu0 }
  0xfb   :  { %v117_v34 = vmax.f32 %v114_v32, 0.0 }
  0xfd   :  { %280 = vmatpush3.xpose.msk.msra.mxu1 %vm129_vm1, %v117_v34 }
 0x100   :  { %282 = vmatmul.mubr.msk.f32.vlgmr.msra.gmra.mrb[0].mxu1 %vm129_vm1, %v118_v35 }
 0x1d3   :  { %v202_v41 = vpop.f32.mrb[0].mxu1 }
 0x1d4   :  { %v203_v42 = vadd.f32 %v202_v41, %v128_v40  ;;  %v283_v43 = vpop.f32.mrb[1].mxu1 }
 0x1d6   :  { %207 = vst.msk [vmem:[#allocation3] sm:$0x1] %vm206_vm2, %v203_v42 }
 0x1d7   :  { %325 = shalt.err (!%p322_p4)
}
 0x1d8   :  { %s326_s8 = scalar_lea.hbm %s450_s5, 16 }
 0x1d9   :  { %p327_p5 = scmp.ne.s32.totalorder %s450_s5, %s326_s8  ;;  %p330_p6 = scmp.lt.u32.totalorder %s326_s8, %s450_s5 }
 0x1db   :  { %p332_p7 = pnand %p330_p6, %p327_p5 }
 0x1dd   :  { %335 = shalt.err (!%p332_p7)
}
 0x1de   :  { %217 = dma.vmem_to_hbm [thread:$0]  %s215_s30, 16, %s450_s5, [#allocation4]  }
 0x1df   :  { %336 = dma.done.wait [#allocation4], 16  }
 0x1e0   :  { %337 = vsyncadd [#allocation4], 4294967280 }
 0x1e1   :  { %221 = vsyncpa [#allocation4], 1 }

</bundles_post_ra>
